<compile_context>
chip_gen: v5e
topology: v5e:2x2
jax: 0.10.0
libtpu: 0.0.40
codegen_flags: <defaults>
</compile_context>

<pallas_src>
import jax
import jax.numpy as jnp
from jax.experimental import pallas as pl
from jax.experimental.pallas import tpu as pltpu

IN_FEATURES = 2      # layer_widths[0]
NUM_CENTRES = 40     # layer_centres[0]
OUT_FEATURES = 1     # layer_widths[1]
AUG = IN_FEATURES + 2  # [x ; ||x||^2 ; 1]


def _round_up(x, m):
    return ((x + m - 1) // m) * m


def rbf_net_kernel(xa_ref, a_ref, wl_ref, b_ref, sw_ref, o_ref):
    """One tile of samples (samples on the lane axis).

    Shapes inside the kernel:
      xa_ref : (AUG, TN)   augmented transposed inputs [x; ||x||^2; 1]
      a_ref  : (K, AUG)    folded RBF matrix [2*gamma*c | -gamma | -gamma*||c||^2]
      wl_ref : (OUT, K)    linear weight
      b_ref  : (OUT, 1)    linear bias
      sw_ref : (1, TN)     per-sample weights
      o_ref  : (OUT, TN)   output (lane-dense)
    """
    # arg[k, n] = -gamma_k * ||x_n - c_k||^2, entirely on the MXU.
    arg = jnp.dot(a_ref[...], xa_ref[...],
                  preferred_element_type=jnp.float32)           # (K, TN)
    phi = jnp.exp(arg)                                          # gaussian basis

    # Linear layer, lane-dense MXU result: (OUT, K) @ (K, TN) -> (OUT, TN)
    out = jnp.dot(wl_ref[...], phi, preferred_element_type=jnp.float32)
    o_ref[...] = (out + b_ref[...]) * sw_ref[...]               # (OUT, TN)


def rbf_network_forward(x, centres, log_sigmas, weight, bias, w, *, tile_n=8192):
    """x: (N, IN); centres: (K, IN); log_sigmas: (K,); weight: (OUT, K);
    bias: (OUT,); w: (N,).  Returns (N, OUT) float32."""
    n = x.shape[0]
    x = jnp.asarray(x, jnp.float32)
    centres = jnp.asarray(centres, jnp.float32)
    log_sigmas = jnp.asarray(log_sigmas, jnp.float32)
    weight = jnp.asarray(weight, jnp.float32)
    bias = jnp.asarray(bias, jnp.float32)
    w = jnp.asarray(w, jnp.float32)

    # --- tile-size selection -------------------------------------------------
    # Force the lane tile to a multiple of 128 (Mosaic (8,128) constraint) and
    # prefer a grid with >= 2 steps so v7x's two TensorCores both get work.
    tile_n = _round_up(max(int(tile_n), 128), 128)
    n_pad128 = _round_up(max(n, 1), 128)
    tn = min(tile_n, n_pad128)
    if n_pad128 > 128 and n_pad128 <= tn:
        tn = _round_up((n_pad128 + 1) // 2, 128)
    n_pad = _round_up(n_pad128, tn)
    grid = (n_pad // tn,)

    # --- wrapper-side parameter folding (done once, tiny arrays) -------------
    gamma = jnp.exp(-2.0 * log_sigmas)                           # (K,)
    c_norm = jnp.sum(centres * centres, axis=1)                  # (K,)
    a_mat = jnp.concatenate(
        [2.0 * gamma[:, None] * centres,                         # (K, IN)
         -gamma[:, None],                                        # (K, 1)
         (-gamma * c_norm)[:, None]],                            # (K, 1)
        axis=1)                                                  # (K, AUG)
    b = bias.reshape(OUT_FEATURES, 1)                            # (OUT, 1)

    # --- augmented, transposed, lane-dense input (single concat + pad) -------
    x_aug = jnp.concatenate(
        [x.T,                                                    # (IN, N)
         jnp.sum(x * x, axis=1)[None, :],                        # (1, N)  ||x||^2
         jnp.ones((1, n), jnp.float32)],                         # (1, N)
        axis=0)                                                  # (AUG, N)
    x_aug = jnp.pad(x_aug, ((0, 0), (0, n_pad - n)))             # (AUG, n_pad)
    sw = jnp.pad(w[None, :], ((0, 0), (0, n_pad - n)))           # (1, n_pad)

    out_t = pl.pallas_call(
        rbf_net_kernel,
        out_shape=jax.ShapeDtypeStruct((OUT_FEATURES, n_pad), jnp.float32),
        grid_spec=pltpu.PrefetchScalarGridSpec(
            num_scalar_prefetch=0,
            grid=grid,
            in_specs=[
                pl.BlockSpec((AUG, tn), lambda i: (0, i)),               # x_aug
                pl.BlockSpec((NUM_CENTRES, AUG), lambda i: (0, 0)),      # A
                pl.BlockSpec((OUT_FEATURES, NUM_CENTRES), lambda i: (0, 0)),  # W
                pl.BlockSpec((OUT_FEATURES, 1), lambda i: (0, 0)),       # bias
                pl.BlockSpec((1, tn), lambda i: (0, i)),                 # sample w
            ],
            out_specs=pl.BlockSpec((OUT_FEATURES, tn), lambda i: (0, i)),
        ),
        compiler_params=pltpu.CompilerParams(
            dimension_semantics=("parallel",),
        ),
    )(x_aug, a_mat, weight, b, sw)

    return out_t[:, :n].T                                        # (N, OUT)


def reference_forward(x, centres, log_sigmas, weight, bias, w):
    """Pure-JAX reference matching the PyTorch module semantics
    (rbf.RBF gaussian basis -> nn.Linear -> per-sample weight multiply)."""
    diff = x[:, None, :] - centres[None, :, :]                   # (N, K, IN)
    dist = jnp.sqrt(jnp.sum(diff * diff, axis=-1)) / jnp.exp(log_sigmas)[None, :]
    phi = jnp.exp(-(dist ** 2))                                  # gaussian basis
    out = phi @ weight.T + bias[None, :]                         # (N, OUT)
    return out * w[:, None]                                      # torch.multiply(out.T, w).T


# TODO(synk): Network.fit (DataLoader / Adam training loop) is not part of the
# forward pass and is not translated.

if __name__ == "__main__":
    key = jax.random.PRNGKey(0)
    k_x, k_c, k_w, k_b, k_sw = jax.random.split(key, 5)

    # Small batch that still exercises the multi-tile (2-step grid) + padding path.
    N = 500

    # Inputs (the original script draws x ~ N(0, 1); per-sample weights given).
    x = jax.random.normal(k_x, (N, IN_FEATURES), dtype=jnp.float32)
    w = jax.random.uniform(k_sw, (N,), minval=0.5, maxval=1.5, dtype=jnp.float32)

    # Parameters, initialized like the PyTorch module:
    #   RBF: centres ~ N(0, 1), log_sigmas = 0
    #   Linear: uniform(-1/sqrt(fan_in), 1/sqrt(fan_in))
    centres = jax.random.normal(k_c, (NUM_CENTRES, IN_FEATURES), dtype=jnp.float32)
    log_sigmas = jnp.zeros((NUM_CENTRES,), dtype=jnp.float32)
    bound = 1.0 / (NUM_CENTRES ** 0.5)
    weight = jax.random.uniform(
        k_w, (OUT_FEATURES, NUM_CENTRES), minval=-bound, maxval=bound,
        dtype=jnp.float32)
    bias = jax.random.uniform(
        k_b, (OUT_FEATURES,), minval=-bound, maxval=bound, dtype=jnp.float32)

    out = rbf_network_forward(x, centres, log_sigmas, weight, bias, w)
    out = jax.block_until_ready(out)

    ref = reference_forward(x, centres, log_sigmas, weight, bias, w)
    assert out.shape == (N, OUT_FEATURES)
    # Tolerance accounts for the ||x||^2 - 2 x.c + ||c||^2 expansion.
    assert jnp.allclose(out, ref, atol=1e-4, rtol=1e-4), (out, ref)

    print("KERNEL_OK")
</pallas_src>

<mosaic_0001>
module attributes {stable_mosaic.version = 11 : i64} {
  func.func @rbf_net_kernel(%arg0: i32, %arg1: memref<4x256xf32, #tpu.memory_space<vmem>>, %arg2: memref<40x4xf32, #tpu.memory_space<vmem>>, %arg3: memref<1x40xf32, #tpu.memory_space<vmem>>, %arg4: memref<1x1xf32, #tpu.memory_space<vmem>>, %arg5: memref<1x256xf32, #tpu.memory_space<vmem>>, %arg6: memref<1x256xf32, #tpu.memory_space<vmem>>) attributes {dimension_semantics = [#tpu.dimension_semantics<parallel>], iteration_bounds = array<i64: 2>, scalar_prefetch = 0 : i64, scratch_operands = 0 : i64, tpu.core_type = #tpu.core_type<tc>, window_params = [{transform_indices = @transform_0, window_bounds = array<i64: 4, 256>}, {pipeline_mode = #tpu.pipeline_mode<synchronous>, transform_indices = @transform_1, window_bounds = array<i64: 40, 4>}, {pipeline_mode = #tpu.pipeline_mode<synchronous>, transform_indices = @transform_2, window_bounds = array<i64: 1, 40>}, {pipeline_mode = #tpu.pipeline_mode<synchronous>, transform_indices = @transform_3, window_bounds = array<i64: 1, 1>}, {transform_indices = @transform_4, window_bounds = array<i64: 1, 256>}, {transform_indices = @transform_5, window_bounds = array<i64: 1, 256>}]} {
    %c0 = arith.constant 0 : index
    %c0_0 = arith.constant 0 : index
    %0 = vector.load %arg2[%c0, %c0_0] : memref<40x4xf32, #tpu.memory_space<vmem>>, vector<40x4xf32>
    %c0_1 = arith.constant 0 : index
    %c0_2 = arith.constant 0 : index
    %1 = vector.load %arg1[%c0_1, %c0_2] : memref<4x256xf32, #tpu.memory_space<vmem>>, vector<4x256xf32>
    %cst = arith.constant dense<0.000000e+00> : vector<40x256xf32>
    %2 = tpu.matmul %0, %1, %cst {dimension_numbers = #tpu.dot_dimension_numbers<[1], [0], [0], [1], [0, 0, 1, 1], [], []>} : vector<40x4xf32>, vector<4x256xf32>, vector<40x256xf32> -> vector<40x256xf32>
    %3 = math.exp %2 : vector<40x256xf32>
    %c0_3 = arith.constant 0 : index
    %c0_4 = arith.constant 0 : index
    %4 = vector.load %arg3[%c0_3, %c0_4] : memref<1x40xf32, #tpu.memory_space<vmem>>, vector<1x40xf32>
    %cst_5 = arith.constant dense<0.000000e+00> : vector<1x256xf32>
    %5 = tpu.matmul %4, %3, %cst_5 {dimension_numbers = #tpu.dot_dimension_numbers<[1], [0], [0], [1], [0, 0, 1, 1], [], []>} : vector<1x40xf32>, vector<40x256xf32>, vector<1x256xf32> -> vector<1x256xf32>
    %c0_6 = arith.constant 0 : index
    %c0_7 = arith.constant 0 : index
    %6 = vector.load %arg4[%c0_6, %c0_7] : memref<1x1xf32, #tpu.memory_space<vmem>>, vector<1x1xf32>
    %7 = vector.broadcast %6 : vector<1x1xf32> to vector<1x256xf32>
    %8 = arith.addf %5, %7 : vector<1x256xf32>
    %c0_8 = arith.constant 0 : index
    %c0_9 = arith.constant 0 : index
    %9 = vector.load %arg5[%c0_8, %c0_9] : memref<1x256xf32, #tpu.memory_space<vmem>>, vector<1x256xf32>
    %10 = arith.mulf %8, %9 : vector<1x256xf32>
    %c0_10 = arith.constant 0 : index
    %c0_11 = arith.constant 0 : index
    %11 = vector.load %arg6[%c0_10, %c0_11] : memref<1x256xf32, #tpu.memory_space<vmem>>, vector<1x256xf32>
    tpu.vector_store %arg6[%c0_10, %c0_11], %10 {strides = array<i32>} : memref<1x256xf32, #tpu.memory_space<vmem>>, vector<1x256xf32>,
    return
  }
  func.func @transform_0(%arg0: i32) -> (i32, i32) {
    %c0_i32 = arith.constant 0 : i32
    %c0_i32_0 = arith.constant 0 : i32
    return %c0_i32, %arg0 : i32, i32
  }
  func.func @transform_1(%arg0: i32) -> (i32, i32) {
    %c0_i32 = arith.constant 0 : i32
    %c0_i32_0 = arith.constant 0 : i32
    %c0_i32_1 = arith.constant 0 : i32
    return %c0_i32, %c0_i32_0 : i32, i32
  }
  func.func @transform_2(%arg0: i32) -> (i32, i32) {
    %c0_i32 = arith.constant 0 : i32
    %c0_i32_0 = arith.constant 0 : i32
    %c0_i32_1 = arith.constant 0 : i32
    return %c0_i32, %c0_i32_0 : i32, i32
  }
  func.func @transform_3(%arg0: i32) -> (i32, i32) {
    %c0_i32 = arith.constant 0 : i32
    %c0_i32_0 = arith.constant 0 : i32
    %c0_i32_1 = arith.constant 0 : i32
    return %c0_i32, %c0_i32_0 : i32, i32
  }
  func.func @transform_4(%arg0: i32) -> (i32, i32) {
    %c0_i32 = arith.constant 0 : i32
    %c0_i32_0 = arith.constant 0 : i32
    return %c0_i32, %arg0 : i32, i32
  }
  func.func @transform_5(%arg0: i32) -> (i32, i32) {
    %c0_i32 = arith.constant 0 : i32
    %c0_i32_0 = arith.constant 0 : i32
    return %c0_i32, %arg0 : i32, i32
  }
}

</mosaic_0001>

<bundles_post_ra>
// kernel: tpu_custom_call.1
= control target key start
LH: loop header
LB: loop body
LE: loop exit
PB: predicated region body
PF: predicated region fallthrough
CT: control target
= control target key end

     0   :  { %s823_s0 = inlined_call_operand.vmem [shape: f32[4,512], index: 0, kind: input, shape index: {}]   ;;  %s824_s1 = inlined_call_operand.vmem [shape: f32[40,4], index: 1, kind: input, shape index: {}]   ;;  %s825_s2 = inlined_call_operand.vmem [shape: f32[1,40], index: 2, kind: input, shape index: {}]   ;;  %s826_s3 = inlined_call_operand.<no memory space> [shape: f32[1,1], index: 3, kind: input, shape index: {}]   ;;  %s827_s4 = inlined_call_operand.vmem [shape: f32[1,512], index: 4, kind: input, shape index: {}]   ;;  %s828_s5 = inlined_call_operand.hbm [shape: f32[1,512], index: 5, kind: output, shape index: {}]  }
   0x1   :  { %v10_v0 = vstv %s826_s3 }
   0x2   :  { %11 = vst [vmem:[#allocation2] sm:$0x1] %v10_v0 }
   0x3   :  { %12 = vsyncpa [#allocation4], 0 }
   0x4   :  { %14 = vsyncpa [#allocation4 + $0x1], 0  ;;  %s704_s20 = smov 0   ;;  %s706_s21 = smov 0  }
   0x5   :  { %s708_s22 = smov 0   ;;  %s710_s23 = smov 0  }
   0x6 LB: > { %s516_s3 = sadd.s32 4294967295, %s668_s23   ;;  %s517_s24 = sadd.s32 4294967294, %s668_s23   ;;  %s668_s23 = sphi %s710_s23, %s834_s23   ;;  %s664_s22 = sphi %s708_s22, %s833_s22   ;;  %s660_s21 = sphi %s706_s21, %s832_s21   ;;  %s656_s20 = sphi %s704_s20, %s831_s20  }
   0x7   : > { %s727_s25 = sadd.s32 1, %s668_s23   ;;  %s142_s26 = sadd.s32 1, %s664_s22 }
   0x8   : > { %s139_s27 = ssub.s32 %s668_s23, %s727_s25  ;;  %p152_p0 = scmp.ne.s32.totalorder %s664_s22, %s660_s21 }
   0x9   : > { %p140_p1 = scmp.eq.s32.totalorder %s139_s27, 0  ;;  %p153_p2 = scmp.eq.s32.totalorder %s516_s3, 1 }
   0xa   : > { %p158_p3 = scmp.ne.s32.totalorder %s660_s21, %s656_s20  ;;  %p159_p4 = scmp.eq.s32.totalorder %s517_s24, 1 }
   0xb   : > { %s737_s28 = scalar_select %p140_p1, %s664_s22, %s142_s26  }
   0xc   : > { %p739_p5 = por %p153_p2, %p152_p0  ;;  %p743_p6 = por %p159_p4, %p158_p3 }
   0xd   : > { %p520_p7 = scmp.ge.s32.totalorder %s668_s23, 1  ;;  %p203_p8 = scmp.lt.s32.totalorder %s668_s23, 3 }
   0xf   : > { %p204_p9 = pnand %p520_p7, %p203_p8 }
  0x10   : > { %s749_s6 = sshll.u32 (!%p204_p9), %s516_s3, 1  ;;  %s626_s26 = scalar_lea.hbm (!%p204_p9), %s828_s5, 4 }
  0x11   : > { %207 = sbr.rel (%p204_p9) target bundleno = 342 (0x156), region = 40  ;;  %p236_p10 = scmp.lt.s32.totalorder (!%p204_p9), %s749_s6, 3 }
  0x12   : > { %s444_s15 = scalar_lea.hbm (!%p204_p9), %s828_s5, %s749_s6 }
  0x13   : > { %s448_s17 = sshll.u32 (!%p204_p9), %s444_s15, 4  ;;  %s449_s17 = int_to_ptr.hbm [resolvable:$true] %s448_s17 }
  0x14   : > { %s620_s19 = sshra.s32 (!%p204_p9), %s449_s17, 4  ;;  %s621_s19 = int_to_ptr.hbm [resolvable:$true] %s620_s19 }
  0x15   : > { %p627_p0 = scmp.lt.s32.totalorder (!%p204_p9), %s621_s19, %s828_s5 }
  0x16   : > { %s753_s7 = scalar_select %p236_p10, %s749_s6, 3  ;;  %vm273_vm0 = vcmask 1043456   ;;  %v247_v2 = vld [vmem:[%s824_s1] sm:$0xff]  ;;  %vm257_vm1 = vcmask 31744   ;;  %v250_v3 = vld [vmem:[%s824_s1 + $0x18] sm:$0xff]  ;;  %v248_v7 = vld [vmem:[%s824_s1 + $0x8] sm:$0xff]  ;;  %v428_v50 = vlaneseq }
  0x17   : > { %v251_v6 = vld [vmem:[%s824_s1 + $0x20] sm:$0xff]  ;;  %v249_v8 = vld [vmem:[%s824_s1 + $0x10] sm:$0xff]  ;;  %v670_v16 = vmov 0   ;;  %v363_v17 = vld [vmem:[#allocation2] sm:$0x1]  ;;  %vm370_vm2 = vcmask 326656  }
  0x18   : > { %s523_s8 = sshll.u32 %s753_s7, 2  ;;  %585 = vset.pattern.permute.xlu0 %v670_v16  ;;  %v362_v36 = vld [vmem:[%s825_s2] sm:$0x1]  ;;  %s244_s10 = scalar_lea.vmem %s827_s4, %s753_s7  ;;  %vm425_vm3 = vcmask 1040384   ;;  %vm430_vm4 = vcmp.lt.s32.totalorder %v428_v50, 256 }
  0x19   : > { %s239_s11 = scalar_lea.vmem %s823_s0, %s523_s8  ;;  %366 = vperm.xlu0 %585, %v363_v17   ;;  %v414_v44 = vld [vmem:[%s244_s10] sm:$0x3]  ;;  %s622_s6 = scalar_lea.hbm %s621_s19, 2 }
  0x1a   : > { %v252_v1 = vld [vmem:[%s239_s11] sm:$0xff]  ;;  %s232_s11 = sand.u32 1, %s660_s21   ;;  %v417_v47 = vperm.slane %v414_v44, 1  ;;  %v416_v49 = vperm.slane %v414_v44, 0  ;;  %p623_p11 = scmp.ne.s32.totalorder %s621_s19, %s622_s6 }
  0x1b   : > { %254 = vst [vmem:[#allocation1] ss:$2 sm:$0xff] %v252_v1  ;;  %s521_s12 = sshll.u32 %s232_s11, 1  ;;  %s434_s18 = scalar_lea.sflag [#allocation4], %s232_s11 }
  0x1c   : > { %s234_s16 = scalar_lea.vmem [#allocation3], %s521_s12  ;;  %p624_p12 = pnand %p623_p11, %p739_p5 }
  0x1d   : > { %s446_s7 = sshll.u32 %s234_s16, 4  ;;  %p628_p1 = scmp.lt.s32.totalorder %s626_s26, %s622_s6  ;;  %s447_s7 = int_to_ptr.vmem [resolvable:$true] %s446_s7 }
  0x1e   : > { %p625_p13 = pneg %p624_p12 }
  0x1f   : > { %p629_p2 = por %p628_p1, %p627_p0 }
  0x21   : > { %p630_p3 = pnand %p629_p2, %p625_p13 }
  0x22   : > { %v255_v4 = vld.sshfl [vmem:[#allocation1] sm:$0xff pattern:$0x75316420]  ;;  %v256_v5 = vld.sshfl [vmem:[#allocation1 + $0x8] sm:$0xff pattern:$0x75316420] }
  0x23   : > { %525 = vmatpush.msk.msra.mxu0 %vm273_vm0, %v255_v4  ;;  %544 = vmatpush.msk.msra.mxu3 %vm273_vm0, %v256_v5 }
  0x24   : > { %526 = vmatmul.msk.f32.vlgmr.msra.gmra.mxu0 %vm257_vm1, %v247_v2  ;;  %535 = vmatmul.msk.f32.vlgmr.msra.gmra.mxu3 %vm257_vm1, %v250_v3 }
  0x25   : > { %531 = vmatpush.msk.msra.mxu1 %vm273_vm0, %v256_v5  ;;  %543 = vmatpush.msk.msra.mxu2 %vm273_vm0, %v255_v4 }
  0x26   : > { %532 = vmatmul.msk.f32.vlgmr.msra.gmra.mxu1 %vm257_vm1, %v247_v2  ;;  %530 = vmatmul.msk.f32.vlgmr.msra.gmra.mxu2 %vm257_vm1, %v251_v6 }
  0x2c   : > { %527 = vmatmul.msk.f32.gmra.mxu0 %vm257_vm1, %v248_v7  ;;  %536 = vmatmul.msk.f32.gmra.mxu3 %vm257_vm1, %v251_v6 }
  0x2e   : > { %533 = vmatmul.msk.f32.gmra.mxu1 %vm257_vm1, %v248_v7 }
  0x34   : > { %528 = vmatmul.msk.f32.gmra.mxu0 %vm257_vm1, %v249_v8 }
  0x36   : > { %534 = vmatmul.msk.f32.gmra.mxu1 %vm257_vm1, %v249_v8 }
  0x3c   : > { %529 = vmatmul.msk.f32.gmra.mxu0 %vm257_vm1, %v250_v3 }
  0x8b   : > { %v367_v42 = vpop.permute.xlu0 %366 }
  0x8c   : > { %v369_v43 = vperm.slane %v367_v42, 0 }
  0xa1   : > { %v295_v9 = vpop.f32.mrf.mxu0 }
  0xa2   : > { %v342_v35 = vmul.f32 1.442695, %v295_v9 }
  0xa3   : > { %v327_v10 = vpop.f32.mrf.mxu1 }
  0xa4   : > { %v344_v26 = vmul.f32 1.442695, %v327_v10 }
  0xa7   : > { %v336_v11 = vpop.f32.mrf.mxu3 }
  0xa8   : > { %v356_v19 = vmul.f32 1.442695, %v336_v11 }
  0xa9   : > { %v298_v12 = vpop.f32.mrf.mxu0  ;;  %v307_v13 = vpop.f32.mrf.mxu2 }
  0xaa   : > { %v358_v14 = vmul.f32 1.442695, %v307_v13  ;;  %v346_v33 = vmul.f32 1.442695, %v298_v12 }
  0xab   : > { %v330_v15 = vpop.f32.mrf.mxu1 }
  0xac   : > { %586 = vpow2.f32 %v358_v14  ;;  %v348_v24 = vmul.f32 1.442695, %v330_v15 }
  0xaf   : > { %v339_v18 = vpop.f32.mrf.mxu3 }
  0xb0   : > { %v360_v20 = vmul.f32 1.442695, %v339_v18 }
  0xb1   : > { %v301_v21 = vpop.f32.mrf.mxu0 }
  0xb2   : > { %588 = vpow2.f32 %v360_v20  ;;  %v587_v22 = vpop.eup %586  ;;  %v350_v30 = vmul.f32 1.442695, %v301_v21 }
  0xb3   : > { %v333_v23 = vpop.f32.mrf.mxu1  ;;  %590 = vpow2.f32 %v356_v19  ;;  %385 = vmatpush.msrb.mxu2 %v587_v22 }
  0xb4   : > { %v352_v25 = vmul.f32 1.442695, %v333_v23 }
  0xb6   : > { %592 = vpow2.f32 %v352_v25 }
  0xb7   : > { %594 = vpow2.f32 %v348_v24 }
  0xb8   : > { %v589_v27 = vpop.eup %588  ;;  %596 = vpow2.f32 %v344_v26 }
  0xb9   : > { %v304_v28 = vpop.f32.mrf.mxu0  ;;  %405 = vmatpush.msrb.mxu3 %v589_v27  ;;  %v591_v29 = vpop.eup %590 }
  0xba   : > { %v354_v31 = vmul.f32 1.442695, %v304_v28 }
  0xbb   : > { %406 = vmatpush.msrb.mxu3 %v591_v29 }
  0xbc   : > { %v593_v32 = vpop.eup %592  ;;  %598 = vpow2.f32 %v354_v31 }
  0xbd   : > { %407 = vmatpush.msrb.mxu3 %v593_v32  ;;  %v595_v34 = vpop.eup %594  ;;  %600 = vpow2.f32 %v350_v30 }
  0xbe   : > { %v597_v37 = vpop.eup %596  ;;  %602 = vpow2.f32 %v346_v33 }
  0xbf   : > { %408 = vmatpush.msrb.mxu3 %v595_v34  ;;  %604 = vpow2.f32 %v342_v35 }
  0xc1   : > { %409 = vmatpush.msrb.mxu3 %v597_v37 }
  0xc2   : > { %v599_v38 = vpop.eup %598  ;;  %538 = vmatmul.msk.f32.vlgmr.msrb.gmra.mxu3 %vm370_vm2, %v362_v36 }
  0xc3   : > { %386 = vmatpush.msrb.mxu2 %v599_v38  ;;  %v601_v39 = vpop.eup %600 }
  0xc4   : > { %v603_v40 = vpop.eup %602 }
  0xc5   : > { %387 = vmatpush.msrb.mxu2 %v601_v39  ;;  %v605_v41 = vpop.eup %604 }
  0xc7   : > { %388 = vmatpush.msrb.mxu2 %v603_v40 }
  0xc9   : > { %389 = vmatpush.msrb.mxu2 %v605_v41 }
  0xca   : > { %537 = vmatmul.msk.f32.vlgmr.msrb.gmra.mxu2 %vm370_vm2, %v362_v36 }
 0x145   : > { %v411_v45 = vpop.f32.mrf.mxu3 }
 0x146   : > { %v412_v46 = vadd.f32 %v411_v45, %v369_v43 }
 0x148   : > { %v421_v48 = vmul.f32 %v417_v47, %v412_v46 }
 0x14a   : > { %v424_v52 = vrot.slane %v421_v48, 7 }
 0x14d   : > { %v391_v51 = vpop.f32.mrf.mxu2 }
 0x14e   : > { %v392_v53 = vadd.f32 %v391_v51, %v369_v43 }
 0x150   : > { %v420_v54 = vmul.f32 %v416_v49, %v392_v53 }
 0x152   : > { %v426_v55 = vsel %vm425_vm3, %v420_v54, %v424_v52 }
 0x153   : > { %432 = vst.msk [vmem:[%s234_s16] sm:$0x3] %vm430_vm4, %v426_v55 }
 0x154   : > { %633 = shalt.err (!%p630_p3)
}
 0x155   : > { %545 = dma.vmem_to_hbm [thread:$0]  (%p739_p5), %s447_s7, 32, %s449_s17, %s434_s18  }
 0x156 PF: > { %p551_p4 = scmp.ge.s32.totalorder %s668_s23, 2  ;;  %s460_s9 = sand.u32 1, %s656_s20  }
 0x157   : > { %s461_s10 = scalar_lea.sflag [#allocation4], %s460_s9 }
 0x158   : > { %p548_p7 = pnand %p551_p4, %p743_p6 }
 0x15a   : > { %p549_p8 = pneg %p548_p7 }
 0x15c   : > { %651 = dma.done.wait (%p549_p8), %s461_s10, 32  }
 0x15d   : > { %653 = vsyncadd (%p549_p8), %s461_s10, 4294967264  ;;  %p17_p9 = scmp.ge.s32.totalorder %s727_s25, 4   ;;  %s831_s20 = smov %s660_s21 }
 0x15e   : > { %s832_s21 = smov %s664_s22  ;;  %s833_s22 = smov %s737_s28 }
 0x15f   : > { %s834_s23 = smov %s727_s25  ;;  %19 = sbr.rel (!%p17_p9) target bundleno = 6 (0x6), region = 78 }
 0x164   :  { %467 = vsyncpa [#allocation4], 1 }
 0x165   :  { %469 = vsyncpa [#allocation4 + $0x1], 1 }

</bundles_post_ra>
